<compile_context>
chip_gen: v6e
topology: v6e:2x2x1
jax: 0.10.0
libtpu: 0.0.40
codegen_flags: <defaults>
</compile_context>

<pallas_src>
import jax
import jax.numpy as jnp
from jax.experimental import pallas as pl
from jax.experimental.pallas import tpu as pltpu


def _round_up(x, m):
    return (x + m - 1) // m * m


def _gate_kernel(title_ref, pg_ref, wx_ref, wh_ref, b_ref, out_ref):
    H = out_ref.shape[-1]
    x_in = title_ref[...]
    p_in = pg_ref[...]
    p = p_in.astype(jnp.float32)

    # Two no-waste K=H projections on the MXU, f32 accumulation.
    ax = jnp.dot(x_in.astype(wx_ref.dtype), wx_ref[...],
                 preferred_element_type=jnp.float32)          # (tb, 3H)
    ah = jnp.dot(p_in.astype(wh_ref.dtype), wh_ref[...],
                 preferred_element_type=jnp.float32)          # (tb, 3H)

    # r and i share one (tb, 2H) sigmoid; bias columns: [r|i|nx|nh].
    ri = jax.nn.sigmoid(ax[:, :2 * H] + ah[:, :2 * H] + b_ref[:, :2 * H])
    r_gate = ri[:, :H]
    i_gate = ri[:, H:]
    n_gate = jnp.tanh(ax[:, 2 * H:] + b_ref[:, 2 * H:3 * H]
                      + r_gate * (ah[:, 2 * H:] + b_ref[:, 3 * H:]))

    # i*p + (1-i)*n  ==  n + i*(p - n)   (one fewer VPU multiply)
    out_ref[...] = (n_gate + i_gate * (p - n_gate)).astype(out_ref.dtype)


def fuse_gate_params(params, *, weight_dtype=jnp.bfloat16):
    """Fuse six torch-layout Linear layers into (H,3H) x/h slabs + (1,4H) bias.

    params: dict with weights w{r,i,n}{x,h} of shape (H, H) (torch (out, in)
    layout) and biases b{r,i,n}{x,h} of shape (H,).
    """
    H = params["wrx"].shape[0]
    wx = jnp.concatenate(
        [params["wrx"].T, params["wix"].T, params["wnx"].T], axis=1
    ).astype(weight_dtype)
    wh = jnp.concatenate(
        [params["wrh"].T, params["wih"].T, params["wnh"].T], axis=1
    ).astype(weight_dtype)
    b = jnp.concatenate([
        params["brx"] + params["brh"],   # r gate bias (fully summable)
        params["bix"] + params["bih"],   # i gate bias (fully summable)
        params["bnx"],                   # n gate, title side
        params["bnh"],                   # n gate, pg side (scaled by r)
    ]).reshape(1, 4 * H).astype(jnp.float32)
    return wx, wh, b


def gate_forward(title, pg, wx_fused, wh_fused, b_fused, *, tile_b=128):
    """title, pg: (B, H) f32/bf16; wx/wh: (H, 3H); b: (1, 4H)."""
    B, H = title.shape
    assert pg.shape == (B, H)
    # TODO(synk): pad H to a multiple of 128 instead of asserting.
    assert H % 128 == 0, "hidden size must be lane-aligned (multiple of 128)"
    assert wx_fused.shape == (H, 3 * H)
    assert wh_fused.shape == (H, 3 * H)
    assert b_fused.shape == (1, 4 * H)

    itemsize = jnp.dtype(title.dtype).itemsize
    # Sublane alignment: 8 rows for 4-byte, 16 for 2-byte, 32 for 1-byte.
    align = {4: 8, 2: 16, 1: 32}[itemsize]
    assert tile_b % align == 0

    # Size the batch tile so the grid has ~8 pipelined steps (>=4 per
    # TensorCore on v7x) so the activation DMA is hidden behind compute,
    # while never dropping below the sublane alignment.
    tb_target = _round_up(max(pl.cdiv(B, 8), align), align)
    tb = max(align, min(tile_b, tb_target))
    grid = (pl.cdiv(B, tb),)   # ragged tail handled by Pallas masking

    in_specs = [
        pl.BlockSpec((tb, H), lambda i: (i, 0)),   # title tile
        pl.BlockSpec((tb, H), lambda i: (i, 0)),   # pg tile
        # Grid-invariant weights/bias: whole array resident in VMEM,
        # no per-step pipelining / double buffering.
        pl.BlockSpec(memory_space=pltpu.MemorySpace.VMEM),
        pl.BlockSpec(memory_space=pltpu.MemorySpace.VMEM),
        pl.BlockSpec(memory_space=pltpu.MemorySpace.VMEM),
    ]
    out_spec = pl.BlockSpec((tb, H), lambda i: (i, 0))

    weight_bytes = (wx_fused.size * wx_fused.dtype.itemsize
                    + wh_fused.size * wh_fused.dtype.itemsize
                    + b_fused.size * b_fused.dtype.itemsize)
    # Double-buffered activation tiles (2 inputs + 1 output).
    act_bytes = 2 * (2 * tb * H + tb * H) * itemsize
    # Per-step f32 compute temporaries: two (tb,3H) projections + ~4 (tb,H)
    # gate/blend temps (they live in VMEM, not vregs, at these tile sizes).
    temp_bytes = 2 * tb * 3 * H * 4 + 4 * tb * H * 4
    needed = weight_bytes + act_bytes + temp_bytes

    # Cap near half the physical per-core VMEM (v7x: 64 MiB -> ~32 MiB cap),
    # but never starve the compiler below what the kernel actually needs.
    cap = 32 << 20
    try:
        cap = min(cap, int(pltpu.get_tpu_info().vmem_capacity_bytes) // 2)
    except Exception:  # pragma: no cover - info query unavailable
        pass
    vmem_limit = int(min(max(1.5 * needed + (4 << 20), 16 << 20), cap))
    vmem_limit = max(vmem_limit, needed + (2 << 20))
    # TODO(synk): for very large H where the (H,3H) slabs exceed the budget,
    # add a second grid axis tiling the gate columns (r/i/n math is columnwise).

    cost = pl.CostEstimate(
        flops=2 * B * H * (3 * H) * 2 + 10 * B * H,
        transcendentals=3 * B * H,
        bytes_accessed=int((3 * B * H) * itemsize + weight_bytes),
    )

    return pl.pallas_call(
        _gate_kernel,
        out_shape=jax.ShapeDtypeStruct((B, H), title.dtype),
        grid_spec=pltpu.PrefetchScalarGridSpec(
            num_scalar_prefetch=0,
            grid=grid,
            in_specs=in_specs,
            out_specs=out_spec,
        ),
        compiler_params=pltpu.CompilerParams(
            dimension_semantics=("parallel",),
            vmem_limit_bytes=vmem_limit,
        ),
        cost_estimate=cost,
    )(title, pg, wx_fused, wh_fused, b_fused)


def _reference(title, pg, params):
    """Pure-JAX reference mirroring the kernel numerics (bf16 matmul inputs,
    f32 accumulation and gating)."""
    def lin(x, w, b):
        wq = w.astype(jnp.bfloat16).astype(jnp.float32)
        xq = x.astype(jnp.bfloat16).astype(jnp.float32)
        return xq @ wq.T + b

    r = jax.nn.sigmoid(lin(title, params["wrx"], params["brx"])
                       + lin(pg, params["wrh"], params["brh"]))
    i = jax.nn.sigmoid(lin(title, params["wix"], params["bix"])
                       + lin(pg, params["wih"], params["bih"]))
    n = jnp.tanh(lin(title, params["wnx"], params["bnx"])
                 + r * lin(pg, params["wnh"], params["bnh"]))
    return i * pg + (1.0 - i) * n


if __name__ == "__main__":
    B, H = 512, 128  # lane-aligned H; batch tile of 64 -> 8 parallel grid steps
    key = jax.random.PRNGKey(0)
    keys = jax.random.split(key, 14)

    title = jax.random.normal(keys[0], (B, H), dtype=jnp.float32)
    pg = jax.random.normal(keys[1], (B, H), dtype=jnp.float32)

    # Deterministic synthetic parameters in torch nn.Linear layout.
    scale = 1.0 / jnp.sqrt(jnp.float32(H))
    names = ["wrx", "wrh", "wix", "wih", "wnx", "wnh"]
    params = {}
    for idx, name in enumerate(names):
        params[name] = jax.random.uniform(
            keys[2 + idx], (H, H), jnp.float32, -scale, scale)
        params["b" + name[1:]] = jax.random.uniform(
            keys[8 + idx], (H,), jnp.float32, -scale, scale)

    wx_fused, wh_fused, b_fused = fuse_gate_params(
        params, weight_dtype=jnp.bfloat16)

    out = gate_forward(title, pg, wx_fused, wh_fused, b_fused, tile_b=128)
    jax.block_until_ready(out)

    ref = _reference(title, pg, params)
    assert out.shape == (B, H)
    max_err = float(jnp.max(jnp.abs(out - ref)))
    assert max_err < 5e-3, f"mismatch vs reference: max abs err {max_err}"

    print("KERNEL_OK")
</pallas_src>

<mosaic_0001>
module attributes {stable_mosaic.version = 11 : i64} {
  func.func @_gate_kernel(%arg0: i32, %arg1: memref<64x128xf32, #tpu.memory_space<vmem>>, %arg2: memref<64x128xf32, #tpu.memory_space<vmem>>, %arg3: memref<128x384xbf16, #tpu.memory_space<vmem>>, %arg4: memref<128x384xbf16, #tpu.memory_space<vmem>>, %arg5: memref<1x512xf32, #tpu.memory_space<vmem>>, %arg6: memref<64x128xf32, #tpu.memory_space<vmem>>) attributes {dimension_semantics = [#tpu.dimension_semantics<parallel>], iteration_bounds = array<i64: 8>, scalar_prefetch = 0 : i64, scratch_operands = 0 : i64, tpu.core_type = #tpu.core_type<tc>, window_params = [{transform_indices = @transform_0, window_bounds = array<i64: 64, 128>}, {transform_indices = @transform_1, window_bounds = array<i64: 64, 128>}, {pipeline_mode = #tpu.pipeline_mode<synchronous>, transform_indices = @transform_2, window_bounds = array<i64: 128, 384>}, {pipeline_mode = #tpu.pipeline_mode<synchronous>, transform_indices = @transform_3, window_bounds = array<i64: 128, 384>}, {pipeline_mode = #tpu.pipeline_mode<synchronous>, transform_indices = @transform_4, window_bounds = array<i64: 1, 512>}, {transform_indices = @transform_5, window_bounds = array<i64: 64, 128>}]} {
    %c0 = arith.constant 0 : index
    %c0_0 = arith.constant 0 : index
    %0 = vector.load %arg1[%c0, %c0_0] : memref<64x128xf32, #tpu.memory_space<vmem>>, vector<64x128xf32>
    %c0_1 = arith.constant 0 : index
    %c0_2 = arith.constant 0 : index
    %1 = vector.load %arg2[%c0_1, %c0_2] : memref<64x128xf32, #tpu.memory_space<vmem>>, vector<64x128xf32>
    %2 = arith.truncf %0 : vector<64x128xf32> to vector<64x128xbf16>
    %c0_3 = arith.constant 0 : index
    %c0_4 = arith.constant 0 : index
    %3 = vector.load %arg3[%c0_3, %c0_4] : memref<128x384xbf16, #tpu.memory_space<vmem>>, vector<128x384xbf16>
    %cst = arith.constant dense<0.000000e+00> : vector<64x384xf32>
    %4 = tpu.matmul %2, %3, %cst {dimension_numbers = #tpu.dot_dimension_numbers<[1], [0], [0], [1], [0, 0, 1, 1], [], []>} : vector<64x128xbf16>, vector<128x384xbf16>, vector<64x384xf32> -> vector<64x384xf32>
    %5 = arith.truncf %1 : vector<64x128xf32> to vector<64x128xbf16>
    %c0_5 = arith.constant 0 : index
    %c0_6 = arith.constant 0 : index
    %6 = vector.load %arg4[%c0_5, %c0_6] : memref<128x384xbf16, #tpu.memory_space<vmem>>, vector<128x384xbf16>
    %cst_7 = arith.constant dense<0.000000e+00> : vector<64x384xf32>
    %7 = tpu.matmul %5, %6, %cst_7 {dimension_numbers = #tpu.dot_dimension_numbers<[1], [0], [0], [1], [0, 0, 1, 1], [], []>} : vector<64x128xbf16>, vector<128x384xbf16>, vector<64x384xf32> -> vector<64x384xf32>
    %8 = vector.extract_strided_slice %4 {offsets = [0, 0], sizes = [64, 256], strides = [1, 1]} : vector<64x384xf32> to vector<64x256xf32>
    %9 = vector.extract_strided_slice %7 {offsets = [0, 0], sizes = [64, 256], strides = [1, 1]} : vector<64x384xf32> to vector<64x256xf32>
    %10 = arith.addf %8, %9 : vector<64x256xf32>
    %c0_8 = arith.constant 0 : index
    %c0_9 = arith.constant 0 : index
    %11 = vector.load %arg5[%c0_8, %c0_9] : memref<1x512xf32, #tpu.memory_space<vmem>>, vector<1x256xf32>
    %12 = vector.broadcast %11 : vector<1x256xf32> to vector<64x256xf32>
    %13 = arith.addf %10, %12 : vector<64x256xf32>
    %14 = arith.negf %13 : vector<64x256xf32>
    %15 = math.exp %14 : vector<64x256xf32>
    %cst_10 = arith.constant 1.000000e+00 : f32
    %16 = vector.broadcast %cst_10 : f32 to vector<64x256xf32>
    %17 = arith.addf %16, %15 : vector<64x256xf32>
    %18 = arith.divf %16, %17 : vector<64x256xf32>
    %19 = vector.extract_strided_slice %18 {offsets = [0, 0], sizes = [64, 128], strides = [1, 1]} : vector<64x256xf32> to vector<64x128xf32>
    %20 = vector.extract_strided_slice %18 {offsets = [0, 128], sizes = [64, 128], strides = [1, 1]} : vector<64x256xf32> to vector<64x128xf32>
    %21 = vector.extract_strided_slice %4 {offsets = [0, 256], sizes = [64, 128], strides = [1, 1]} : vector<64x384xf32> to vector<64x128xf32>
    %c0_11 = arith.constant 0 : index
    %c256 = arith.constant 256 : index
    %22 = vector.load %arg5[%c0_11, %c256] : memref<1x512xf32, #tpu.memory_space<vmem>>, vector<1x128xf32>
    %23 = vector.broadcast %22 : vector<1x128xf32> to vector<64x128xf32>
    %24 = arith.addf %21, %23 : vector<64x128xf32>
    %25 = vector.extract_strided_slice %7 {offsets = [0, 256], sizes = [64, 128], strides = [1, 1]} : vector<64x384xf32> to vector<64x128xf32>
    %c0_12 = arith.constant 0 : index
    %c384 = arith.constant 384 : index
    %26 = vector.load %arg5[%c0_12, %c384] : memref<1x512xf32, #tpu.memory_space<vmem>>, vector<1x128xf32>
    %27 = vector.broadcast %26 : vector<1x128xf32> to vector<64x128xf32>
    %28 = arith.addf %25, %27 : vector<64x128xf32>
    %29 = arith.mulf %19, %28 : vector<64x128xf32>
    %30 = arith.addf %24, %29 : vector<64x128xf32>
    %31 = math.tanh %30 : vector<64x128xf32>
    %32 = arith.subf %1, %31 : vector<64x128xf32>
    %33 = arith.mulf %20, %32 : vector<64x128xf32>
    %34 = arith.addf %31, %33 : vector<64x128xf32>
    %c0_13 = arith.constant 0 : index
    %c0_14 = arith.constant 0 : index
    %35 = vector.load %arg6[%c0_13, %c0_14] : memref<64x128xf32, #tpu.memory_space<vmem>>, vector<64x128xf32>
    tpu.vector_store %arg6[%c0_13, %c0_14], %34 {strides = array<i32>} : memref<64x128xf32, #tpu.memory_space<vmem>>, vector<64x128xf32>,
    return
  }
  func.func @transform_0(%arg0: i32) -> (i32, i32) {
    %c0_i32 = arith.constant 0 : i32
    %c0_i32_0 = arith.constant 0 : i32
    return %arg0, %c0_i32 : i32, i32
  }
  func.func @transform_1(%arg0: i32) -> (i32, i32) {
    %c0_i32 = arith.constant 0 : i32
    %c0_i32_0 = arith.constant 0 : i32
    return %arg0, %c0_i32 : i32, i32
  }
  func.func @transform_2(%arg0: i32) -> (i32, i32) {
    %c0_i32 = arith.constant 0 : i32
    %c0_i32_0 = arith.constant 0 : i32
    %c0_i32_1 = arith.constant 0 : i32
    return %c0_i32, %c0_i32_0 : i32, i32
  }
  func.func @transform_3(%arg0: i32) -> (i32, i32) {
    %c0_i32 = arith.constant 0 : i32
    %c0_i32_0 = arith.constant 0 : i32
    %c0_i32_1 = arith.constant 0 : i32
    return %c0_i32, %c0_i32_0 : i32, i32
  }
  func.func @transform_4(%arg0: i32) -> (i32, i32) {
    %c0_i32 = arith.constant 0 : i32
    %c0_i32_0 = arith.constant 0 : i32
    %c0_i32_1 = arith.constant 0 : i32
    return %c0_i32, %c0_i32_0 : i32, i32
  }
  func.func @transform_5(%arg0: i32) -> (i32, i32) {
    %c0_i32 = arith.constant 0 : i32
    %c0_i32_0 = arith.constant 0 : i32
    return %arg0, %c0_i32 : i32, i32
  }
}

</mosaic_0001>

<bundles_post_ra>
// kernel: tpu_custom_call.1
= control target key start
LH: loop header
LB: loop body
LE: loop exit
PB: predicated region body
PF: predicated region fallthrough
CT: control target
= control target key end

     0   :  { %s2326_s0 = inlined_call_operand.hbm [shape: f32[512,128], index: 0, kind: input, shape index: {}]   ;;  %s2327_s1 = inlined_call_operand.hbm [shape: f32[512,128], index: 1, kind: input, shape index: {}]   ;;  %s2328_s2 = inlined_call_operand.hbm [shape: bf16[128,384], index: 2, kind: input, shape index: {}]   ;;  %s2329_s3 = inlined_call_operand.hbm [shape: bf16[128,384], index: 3, kind: input, shape index: {}]   ;;  %s2330_s4 = inlined_call_operand.vmem [shape: f32[1,512], index: 4, kind: input, shape index: {}]   ;;  %s2331_s5 = inlined_call_operand.hbm [shape: f32[512,128], index: 5, kind: output, shape index: {}]  }
   0x1   :  { %2335 = sst [smem:[#allocation16_spill]] %s2326_s0 }
   0x2   :  { %2336 = sst [smem:[#allocation17_spill]] %s2328_s2 }
   0x3   :  { %10 = vsyncpa [#allocation3], 0 }
   0x4   :  { %12 = vsyncpa [#allocation3 + $0x1], 0 }
   0x5   :  { %13 = vsyncpa [#allocation6], 0 }
   0x6   :  { %15 = vsyncpa [#allocation6 + $0x1], 0 }
   0x7   :  { %16 = vsyncpa [#allocation9], 0 }
   0x8   :  { %17 = vsyncpa [#allocation4], 0 }
   0x9   :  { %19 = vsyncpa [#allocation4 + $0x1], 0  ;;  %s1905_s18 = smov 0   ;;  %s1907_s19 = smov 0  }
   0xa   :  { %s1909_s20 = smov 0   ;;  %s1911_s21 = smov 0  }
   0xb LB: > { %s1926_s22 = sadd.s32 4294967295, %s1861_s21   ;;  %s1291_s23 = sadd.s32 4294967294, %s1861_s21   ;;  %s1861_s21 = sphi %s1911_s21, %s2356_s21   ;;  %s1857_s20 = sphi %s1909_s20, %s2355_s20   ;;  %s1853_s19 = sphi %s1907_s19, %s2354_s19   ;;  %s1849_s18 = sphi %s1905_s18, %s2353_s18  }
   0xc   : > { %p45_p0 = scmp.ne.s32.totalorder %s1853_s19, %s1849_s18  ;;  %p2332_p1 = scmp.eq.s32.totalorder %s1926_s22, 0 }
   0xd   : > { %p164_p3 = scmp.eq.s32.totalorder %s1291_s23, 7  ;;  %p1292_p5 = scmp.ge.s32.totalorder %s1861_s21, 1 }
   0xe   : > { %p1935_p4 = por %p2332_p1, %p45_p0  ;;  %p171_p7 = scmp.lt.s32.totalorder %s1861_s21, 9 }
   0xf   : > { %p1940_p6 = por %p164_p3, %p45_p0  ;;  %s1863_s27 = smov [#allocation7]  }
  0x10   : > { %s2337_s24 = scalar_select %p1935_p4, 1, 0 }
  0x11   : > { %s2338_s25 = scalar_select %p1940_p6, 1, 0 }
  0x12   : > { %p1945_p8 = pnand %p1292_p5, %p171_p7  ;;  %s183_s28 = sshll.u32 %s1863_s27, 4  ;;  %s184_s28 = int_to_ptr.vmem [resolvable:$true] %s183_s28 }
  0x13   : > { %s1864_s30 = smov [#allocation8]   ;;  %s1688_s7 = scalar_lea.vmem %s184_s28, 3072 }
  0x14   : > { %p1468_p9 = pneg %p1945_p8  ;;  %s196_s6 = sshll.u32 %s1864_s30, 4  ;;  %s197_s6 = int_to_ptr.vmem [resolvable:$true] %s196_s6 }
  0x15   : > { %p1689_p12 = scmp.ne.s32.totalorder %s184_s28, %s1688_s7  ;;  %p1696_p3 = scmp.lt.s32.totalorder %s184_s28, %s184_s28 }
  0x16   : > { %p1953_p10 = pnand %p1468_p9, %p2332_p1  ;;  %p1697_p5 = scmp.lt.s32.totalorder %s1688_s7, %s1688_s7 }
  0x18   : > { %p1679_p11 = pneg %p1953_p10  ;;  %p1698_p7 = por %p1697_p5, %p1696_p3 }
  0x1a   : > { %p1691_p13 = pnand %p1689_p12, %p1679_p11 }
  0x1c   : > { %p1692_p0 = pneg %p1691_p13 }
  0x1e   : > { %p1699_p9 = pnand %p1698_p7, %p1692_p0 }
  0x20   : > { %1702 = shalt.err (!%p1699_p9)
}
  0x21   : > { %s1865_s8 = smov 192   ;;  %s1866_s9 = smov 12  }
  0x22   : > { %s2341_s2 = sld [smem:[#allocation17_spill]]  ;;  %s1714_s12 = scalar_lea.vmem %s197_s6, 3072 }
  0x23   : > { %p1715_p1 = scmp.ne.s32.totalorder %s197_s6, %s1714_s12  ;;  %p1722_p2 = scmp.lt.s32.totalorder %s197_s6, %s197_s6 }
  0x24   : > { %p1723_p6 = scmp.lt.s32.totalorder %s1714_s12, %s1714_s12 }
  0x25   : > { %p1717_p12 = pnand %p1715_p1, %p1679_p11 }
  0x26   : > { %p1724_p3 = por %p1723_p6, %p1722_p2 }
  0x27   : > { %p1718_p13 = pneg %p1717_p12 }
  0x28   : > { %1471 = dma.hbm_to_vmem [thread:$0]  (!%p1953_p10), %s2341_s2, 3072, %s184_s28, [#allocation6], %s1865_s8, %s1865_s8, %s1866_s9  }
  0x29   : > { %p1725_p0 = pnand %p1724_p3, %p1718_p13 }
  0x2b   : > { %1728 = shalt.err (!%p1725_p0)
}
  0x2c   : > { %1474 = dma.hbm_to_vmem [thread:$0]  (!%p1953_p10), %s2329_s3, 3072, %s197_s6, [#allocation9], %s1865_s8, %s1865_s8, %s1866_s9  }
  0x2d   : > { %s1976_s15 = sadd.s32 1, %s1861_s21   ;;  %s32_s16 = sadd.s32 1, %s1857_s20 }
  0x2e   : > { %s29_s17 = ssub.s32 %s1861_s21, %s1976_s15  ;;  %p39_p1 = scmp.ne.s32.totalorder %s1857_s20, %s1853_s19 }
  0x2f   : > { %p30_p2 = scmp.eq.s32.totalorder %s29_s17, 0  ;;  %p40_p6 = scmp.eq.s32.totalorder %s1861_s21, 0 }
  0x30   : > { %p2342_p11 = scmp.eq.s32.totalorder %s1926_s22, 7  ;;  %p1488_p7 = scmp.lt.s32.totalorder %s1861_s21, 8 }
  0x31   : > { %s1992_s27 = scalar_select %p30_p2, %s1857_s20, %s32_s16  }
  0x32   : > { %p1986_p5 = por %p2342_p11, %p39_p1  ;;  %p41_p9 = por %p40_p6, %p39_p1 }
  0x33   : > { %s213_s28 = sand.u32 1, %s1857_s20   ;;  %s1379_s30 = sshll.u32 %s1861_s21, 10 }
  0x34   : > { %s2343_s23 = scalar_select %p1986_p5, 1, 0 }
  0x35   : > { %s1995_s29 = sshll.u32 %s213_s28, 6  ;;  %s2344_s0 = sld [smem:[#allocation16_spill]] }
  0x36   : > { %s217_s9 = scalar_lea.vmem [#allocation2], %s1995_s29  ;;  %p2008_p10 = pnand %p1488_p7, %p41_p9 }
  0x37   : > { %s224_s10 = sshll.u32 %s217_s9, 4  ;;  %s2012_s12 = scalar_lea.sflag [#allocation3], %s213_s28  ;;  %s2006_s10 = int_to_ptr.vmem [resolvable:$true] %s224_s10 }
  0x38   : > { %p1731_p13 = pneg %p2008_p10 }
  0x3b   : > { %s2003_s8 = scalar_lea.hbm %s2344_s0, %s1379_s30  ;;  %s1734_s17 = scalar_lea.hbm %s2344_s0, 8192 }
  0x3c   : > { %s1729_s13 = scalar_lea.hbm %s2003_s8, 1024  ;;  %p1735_p1 = scmp.lt.s32.totalorder %s2003_s8, %s2344_s0 }
  0x3d   : > { %p1730_p12 = scmp.ne.s32.totalorder %s2003_s8, %s1729_s13  ;;  %p1736_p2 = scmp.lt.s32.totalorder %s1734_s17, %s1729_s13 }
  0x3f   : > { %p1732_p3 = pnand %p1731_p13, %p1730_p12  ;;  %p1737_p6 = por %p1736_p2, %p1735_p1 }
  0x41   : > { %p1733_p0 = pneg %p1732_p3 }
  0x43   : > { %p1738_p11 = pnand %p1737_p6, %p1733_p0 }
  0x45   : > { %1741 = shalt.err (!%p1738_p11)
}
  0x46   : > { %s1742_s28 = scalar_lea.vmem %s2006_s10, 1024  ;;  %s1867_s9 = smov [#allocation2]  }
  0x47   : > { %p1743_p7 = scmp.ne.s32.totalorder %s2006_s10, %s1742_s28  ;;  %s1747_s14 = sshll.u32 %s1867_s9, 4  ;;  %s1748_s14 = int_to_ptr.vmem [resolvable:$false] %s1747_s14 }
  0x48   : > { %s1749_s16 = scalar_lea.vmem %s1748_s14, 2048  ;;  %p1750_p3 = scmp.lt.s32.totalorder %s2006_s10, %s1748_s14 }
  0x49   : > { %p1745_p9 = pnand %p1743_p7, %p1731_p13  ;;  %p1751_p5 = scmp.lt.s32.totalorder %s1749_s16, %s1742_s28 }
  0x4b   : > { %p1746_p12 = pneg %p1745_p9  ;;  %p1752_p4 = por %p1751_p5, %p1750_p3 }
  0x4d   : > { %p1753_p1 = pnand %p1752_p4, %p1746_p12 }
  0x4f   : > { %1756 = shalt.err (!%p1753_p1)
}
  0x50   : > { %s1868_s13 = smov 128   ;;  %s1869_s17 = smov 8  }
  0x51   : > { %1478 = dma.hbm_to_vmem [thread:$0]  (!%p2008_p10), %s2003_s8, 1024, %s2006_s10, %s2012_s12, %s1868_s13, %s1868_s13, %s1869_s17  }
  0x52   : > { %s2047_s28 = scalar_lea.hbm %s2327_s1, %s1379_s30  ;;  %s238_s9 = scalar_lea.vmem [#allocation5], %s1995_s29 }
  0x53   : > { %s245_s14 = sshll.u32 %s238_s9, 4  ;;  %s234_s16 = sand.u32 1, %s1861_s21   ;;  %s2050_s14 = int_to_ptr.vmem [resolvable:$true] %s245_s14 }
  0x54   : > { %s235_s0 = scalar_lea.sflag [#allocation6], %s234_s16  ;;  %s1757_s2 = scalar_lea.hbm %s2047_s28, 1024 }
  0x55   : > { %p1758_p4 = scmp.ne.s32.totalorder %s2047_s28, %s1757_s2  ;;  %s1762_s30 = scalar_lea.hbm %s2327_s1, 8192 }
  0x56   : > { %p1763_p2 = scmp.lt.s32.totalorder %s2047_s28, %s2327_s1  ;;  %p1764_p6 = scmp.lt.s32.totalorder %s1762_s30, %s1757_s2 }
  0x57   : > { %p1760_p5 = pnand %p1758_p4, %p1731_p13 }
  0x58   : > { %p1765_p11 = por %p1764_p6, %p1763_p2 }
  0x59   : > { %p1761_p0 = pneg %p1760_p5 }
  0x5b   : > { %p1766_p7 = pnand %p1765_p11, %p1761_p0 }
  0x5d   : > { %1769 = shalt.err (!%p1766_p7)
}
  0x5e   : > { %s1770_s29 = scalar_lea.vmem %s2050_s14, 1024  ;;  %s1870_s7 = smov [#allocation5]  }
  0x5f   : > { %p1771_p9 = scmp.ne.s32.totalorder %s2050_s14, %s1770_s29  ;;  %s1775_s9 = sshll.u32 %s1870_s7, 4  ;;  %s1776_s9 = int_to_ptr.vmem [resolvable:$false] %s1775_s9 }
  0x60   : > { %s1777_s16 = scalar_lea.vmem %s1776_s9, 2048  ;;  %p1778_p1 = scmp.lt.s32.totalorder %s2050_s14, %s1776_s9 }
  0x61   : > { %p1773_p12 = pnand %p1771_p9, %p1731_p13  ;;  %p1779_p4 = scmp.lt.s32.totalorder %s1777_s16, %s1770_s29 }
  0x63   : > { %p1774_p3 = pneg %p1773_p12  ;;  %p1780_p5 = por %p1779_p4, %p1778_p1 }
  0x65   : > { %p1781_p2 = pnand %p1780_p5, %p1774_p3 }
  0x67   : > { %1784 = shalt.err (!%p1781_p2)
}
  0x68   : > { %1481 = dma.hbm_to_vmem [thread:$0]  (!%p2008_p10), %s2047_s28, 1024, %s2050_s14, %s235_s0, %s1868_s13, %s1868_s13, %s1869_s17  }
  0x69   : > { %257 = sbr.rel (%p1945_p8) target bundleno = 481 (0x1e1), region = 40  ;;  %s2081_s2 = sand.u32 (!%p1945_p8), 1, %s1853_s19  }
  0x6a   : > { %s2084_s8 = sshll.u32 (!%p1945_p8), %s2081_s2, 6  ;;  %s260_s10 = scalar_lea.sflag (!%p1945_p8), [#allocation3], %s2081_s2 }
  0x6b   : > { %s2088_s11 = scalar_lea.vmem (!%p1945_p8), [#allocation2], %s2084_s8  ;;  %p2346_p13 = scmp.ne.s32.totalorder (!%p1945_p8), %s2337_s24, 0 }
  0x6e   : > { %1828 = dma.done.wait (%p2346_p13), %s260_s10, 1024  }
  0x6f   : > { %1830 = vsyncadd (%p2346_p13), %s260_s10, 4294966272  ;;  %s268_s0 = sand.u32 1, %s1926_s22   ;;  %s2096_s13 = scalar_lea.vmem [#allocation5], %s2084_s8 }
  0x70   : > { %s269_s26 = scalar_lea.sflag [#allocation6], %s268_s0 }
  0x71   : > { %1832 = dma.done.wait (%p2346_p13), %s269_s26, 1024  }
  0x72   : > { %1834 = vsyncadd (%p2346_p13), %s269_s26, 4294966272  ;;  %p2347_p8 = scmp.eq.s32.totalorder %s1926_s22, 0 }
  0x74   : > { %1836 = dma.done.wait (%p2347_p8), [#allocation6], 3072   ;;  %p2348_p10 = pmov %p2347_p8 }
  0x75   : > { %p2349_p0 = pmov %p2347_p8 }
  0x76   : > { %1838 = vsyncadd (%p2348_p10), [#allocation6], 4294964224 }
  0x77   : > { %1840 = dma.done.wait (%p2349_p0), [#allocation9], 3072   ;;  %p2350_p6 = pmov %p2349_p0 }
  0x78   : > { %v1871_v0 = vmov 0   ;;  %v1533_v1 = vld [vmem:[#allocation7 + $0xac] ss:$12 sps:$4 sm:$0xff]   ;;  %v1535_v2 = vld [vmem:[#allocation7 + $0xa8] ss:$12 sps:$4 sm:$0xff]   ;;  %v316_v10 = vld [vmem:[%s2088_s11] sm:$0xff] }
  0x79   : > { %1842 = vsyncadd (%p2350_p6), [#allocation9], 4294964224  ;;  %528 = vmatprep.mubr.bf16.mxu0 %v1871_v0  ;;  %496 = vmatprep.subr.bf16.mxu0 %v1533_v1  ;;  %v1536_v3 = vld [vmem:[#allocation7 + $0x94] ss:$12 sps:$4 sm:$0xff]   ;;  %v1538_v4 = vld [vmem:[#allocation7 + $0x90] ss:$12 sps:$4 sm:$0xff]  }
  0x7a   : > { %497 = vmatpush1.bf16.msra.mxu0 %v1535_v2  ;;  %v1539_v5 = vld [vmem:[#allocation7 + $0x7c] ss:$12 sps:$4 sm:$0xff]   ;;  %v1541_v6 = vld [vmem:[#allocation7 + $0x78] ss:$12 sps:$4 sm:$0xff]   ;;  %v1544_v8 = vld [vmem:[#allocation7 + $0x60] ss:$12 sps:$4 sm:$0xff]  }
  0x7b   : > { %498 = vmatprep.subr.bf16.mxu0 %v1536_v3  ;;  %v1542_v7 = vld [vmem:[#allocation7 + $0x64] ss:$12 sps:$4 sm:$0xff]   ;;  %v1545_v9 = vld [vmem:[#allocation7 + $0x4c] ss:$12 sps:$4 sm:$0xff]   ;;  %v1547_v15 = vld [vmem:[#allocation7 + $0x48] ss:$12 sps:$4 sm:$0xff]  }
  0x7c   : > { %v317_v11 = vld [vmem:[%s2088_s11 + $0x8] sm:$0xff]  ;;  %v1557_v13 = vld [vmem:[#allocation7 + $0xb0] ss:$12 sps:$4 sm:$0xff]   ;;  %v1561_v14 = vld [vmem:[#allocation7 + $0x98] ss:$12 sps:$4 sm:$0xff]   ;;  %s2256_s6 = scalar_lea.vmem [#allocation10], %s2084_s8 }
  0x7d   : > { %v332_v12 = vpack.c.bf16 %v317_v11, %v316_v10  ;;  %1406 = vmatprep.subr.bf16.mxu1 %v1557_v13  ;;  %v1548_v16 = vld [vmem:[#allocation7 + $0x34] ss:$12 sps:$4 sm:$0xff]   ;;  %v1550_v18 = vld [vmem:[#allocation7 + $0x30] ss:$12 sps:$4 sm:$0xff]   ;;  %v1553_v21 = vld [vmem:[#allocation7 + $0x18] ss:$12 sps:$4 sm:$0xff]  }
  0x7e   : > { %499 = vmatpush1.bf16.msra.mxu0 %v1538_v4  ;;  %1407 = vmatpush3.bf16.msra.mxu1 %v1557_v13  ;;  %v1565_v17 = vld [vmem:[#allocation7 + $0x80] ss:$12 sps:$4 sm:$0xff]   ;;  %v1551_v19 = vld [vmem:[#allocation7 + $0x1c] ss:$12 sps:$4 sm:$0xff]   ;;  %v1554_v22 = vld [vmem:[#allocation7 + $0x4] ss:$12 sps:$4 sm:$0xff]  }
  0x7f   : > { %500 = vmatprep.subr.bf16.mxu0 %v1539_v5  ;;  %1422 = vmatprep.mubr.bf16.mxu1 %v332_v12  ;;  %v1569_v20 = vld [vmem:[#allocation7 + $0x68] ss:$12 sps:$4 sm:$0xff]   ;;  %v1573_v23 = vld [vmem:[#allocation7 + $0x50] ss:$12 sps:$4 sm:$0xff]   ;;  %v1556_v24 = vld [vmem:[#allocation7] ss:$12 sps:$4 sm:$0xff]  }
  0x80   : > { %1408 = vmatprep.subr.bf16.mxu1 %v1561_v14  ;;  %v1560_v25 = vld [vmem:[#allocation8 + $0xac] ss:$12 sps:$4 sm:$0xff]   ;;  %v1558_v27 = vld [vmem:[#allocation8 + $0xa8] ss:$12 sps:$4 sm:$0xff]   ;;  %v1562_v30 = vld [vmem:[#allocation8 + $0x90] ss:$12 sps:$4 sm:$0xff]  }
  0x81   : > { %v1577_v26 = vld [vmem:[#allocation7 + $0x38] ss:$12 sps:$4 sm:$0xff]   ;;  %v1564_v28 = vld [vmem:[#allocation8 + $0x94] ss:$12 sps:$4 sm:$0xff]   ;;  %v1568_v33 = vld [vmem:[#allocation8 + $0x7c] ss:$12 sps:$4 sm:$0xff]  }
  0x82   : > { %501 = vmatpush1.bf16.msra.mxu0 %v1541_v6  ;;  %1409 = vmatpush3.bf16.msra.mxu1 %v1561_v14  ;;  %v1581_v29 = vld [vmem:[#allocation7 + $0x20] ss:$12 sps:$4 sm:$0xff]   ;;  %v318_v31 = vld [vmem:[%s2088_s11 + $0x10] sm:$0xff]  ;;  %v319_v32 = vld [vmem:[%s2088_s11 + $0x18] sm:$0xff]  ;;  %s1381_s29 = sshll.u32 %s1926_s22, 10  ;;  %s1176_s7 = sshll.u32 %s2256_s6, 4  ;;  %s2283_s7 = int_to_ptr.vmem [resolvable:$true] %s1176_s7 }
  0x83   : > { %502 = vmatprep.subr.bf16.mxu0 %v1542_v7  ;;  %1410 = vmatprep.subr.bf16.mxu1 %v1565_v17  ;;  %v1585_v34 = vld [vmem:[#allocation7 + $0x8] ss:$12 sps:$4 sm:$0xff]   ;;  %v333_v35 = vpack.c.bf16 %v319_v32, %v318_v31  ;;  %v1566_v36 = vld [vmem:[#allocation8 + $0x78] ss:$12 sps:$4 sm:$0xff]   ;;  %v1589_v38 = vld [vmem:[#allocation8 + $0xb0] ss:$12 sps:$4 sm:$0xff]   ;;  %s2281_s8 = scalar_lea.hbm %s2331_s5, %s1381_s29 }
  0x84   : > { %v1572_v37 = vld [vmem:[#allocation8 + $0x64] ss:$12 sps:$4 sm:$0xff]   ;;  %v1570_v39 = vld [vmem:[#allocation8 + $0x60] ss:$12 sps:$4 sm:$0xff]   ;;  %v1574_v45 = vld [vmem:[#allocation8 + $0x48] ss:$12 sps:$4 sm:$0xff]  }
  0x85   : > { %v320_v40 = vld [vmem:[%s2088_s11 + $0x20] sm:$0xff]  ;;  %v321_v41 = vld [vmem:[%s2088_s11 + $0x28] sm:$0xff]  ;;  %v322_v48 = vld [vmem:[%s2088_s11 + $0x30] sm:$0xff]  ;;  %s1163_s10 = scalar_lea.sflag [#allocation4], %s2081_s2  ;;  %p2351_p7 = scmp.ne.s32.totalorder %s2343_s23, 0 }
  0x86   : > { %503 = vmatpush1.bf16.msra.mxu0 %v1544_v8  ;;  %1411 = vmatpush3.bf16.msra.mxu1 %v1565_v17  ;;  %v1576_v42 = vld [vmem:[#allocation8 + $0x4c] ss:$12 sps:$4 sm:$0xff]   ;;  %v334_v44 = vpack.c.bf16 %v321_v41, %v320_v40  ;;  %v1580_v46 = vld [vmem:[#allocation8 + $0x34] ss:$12 sps:$4 sm:$0xff]   ;;  %v1578_v50 = vld [vmem:[#allocation8 + $0x30] ss:$12 sps:$4 sm:$0xff]  }
  0x87   : > { %504 = vmatprep.subr.bf16.mxu0 %v1545_v9  ;;  %1412 = vmatprep.subr.bf16.mxu1 %v1569_v20  ;;  %v1590_v43 = vld [vmem:[#allocation8 + $0x98] ss:$12 sps:$4 sm:$0xff]   ;;  %v1591_v47 = vld [vmem:[#allocation8 + $0x80] ss:$12 sps:$4 sm:$0xff]   ;;  %v1584_v51 = vld [vmem:[#allocation8 + $0x1c] ss:$12 sps:$4 sm:$0xff]  }
  0x88   : > { %v323_v49 = vld [vmem:[%s2088_s11 + $0x38] sm:$0xff]  ;;  %v2123_v52 = vld [vmem:[%s2096_s13] sm:$0xff]  ;;  %v2126_v53 = vld [vmem:[%s2096_s13 + $0x8] sm:$0xff]  ;;  %s1785_s11 = scalar_lea.vmem %s2283_s7, 1024  ;;  %s1872_s22 = smov [#allocation10]  }
  0x89   : > { %v335_v54 = vpack.c.bf16 %v323_v49, %v322_v48  ;;  %v1592_v55 = vld [vmem:[#allocation8 + $0x68] ss:$12 sps:$4 sm:$0xff]   ;;  %v1582_v56 = vld [vmem:[#allocation8 + $0x18] ss:$12 sps:$4 sm:$0xff]   ;;  %v634_v57 = vpack.c.bf16 %v2126_v53, %v2123_v52  ;;  %v1593_v59 = vld [vmem:[#allocation8 + $0x50] ss:$12 sps:$4 sm:$0xff]   ;;  %p1786_p11 = scmp.ne.s32.totalorder %s2283_s7, %s1785_s11 }
  0x8a   : > { %505 = vmatpush1.bf16.msra.mxu0 %v1547_v15  ;;  %1413 = vmatpush3.bf16.msra.mxu1 %v1569_v20  ;;  %v1588_v58 = vld [vmem:[#allocation8 + $0x4] ss:$12 sps:$4 sm:$0xff]   ;;  %v1586_v60 = vld [vmem:[#allocation8] ss:$12 sps:$4 sm:$0xff]   ;;  %v2136_v1 = vld [vmem:[%s2096_s13 + $0x18] sm:$0xff]  ;;  %v954_v20 = vlaneseq  ;;  %s1789_s0 = sshll.u32 %s1872_s22, 4  ;;  %s1790_s0 = int_to_ptr.vmem [resolvable:$false] %s1789_s0 }
  0x8b   : > { %506 = vmatprep.subr.bf16.mxu0 %v1548_v16  ;;  %1414 = vmatprep.subr.bf16.mxu1 %v1573_v23  ;;  %v1594_v61 = vld [vmem:[#allocation8 + $0x38] ss:$12 sps:$4 sm:$0xff]   ;;  %v1595_v62 = vld [vmem:[#allocation8 + $0x20] ss:$12 sps:$4 sm:$0xff]   ;;  %v2133_v63 = vld [vmem:[%s2096_s13 + $0x10] sm:$0xff]  ;;  %p1787_p9 = pnand %p1786_p11, %p2351_p7  ;;  %s1791_s26 = scalar_lea.vmem %s1790_s0, 2048 }
  0x8c   : > { %v1596_v2 = vld [vmem:[#allocation8 + $0x8] ss:$12 sps:$4 sm:$0xff]   ;;  %v635_v3 = vpack.c.bf16 %v2136_v1, %v2133_v63  ;;  %v2142_v4 = vld [vmem:[%s2096_s13 + $0x20] sm:$0xff]  ;;  %v2153_v8 = vld [vmem:[%s2096_s13 + $0x38] sm:$0xff]  ;;  %p1792_p3 = scmp.lt.s32.totalorder %s2283_s7, %s1790_s0  ;;  %p1793_p1 = scmp.lt.s32.totalorder %s1791_s26, %s1785_s11 }
  0x8d   : > { %v2145_v5 = vld [vmem:[%s2096_s13 + $0x28] sm:$0xff]  ;;  %v2150_v7 = vld [vmem:[%s2096_s13 + $0x30] sm:$0xff]  ;;  %p1788_p12 = pneg %p1787_p9 }
  0x8e   : > { %507 = vmatpush1.bf16.msra.mxu0 %v1550_v18  ;;  %1415 = vmatpush3.bf16.msra.mxu1 %v1573_v23  ;;  %v636_v6 = vpack.c.bf16 %v2145_v5, %v2142_v4  ;;  %v637_v9 = vpack.c.bf16 %v2153_v8, %v2150_v7  ;;  %p1794_p4 = por %p1793_p1, %p1792_p3 }
  0x8f   : > { %508 = vmatprep.subr.bf16.mxu0 %v1551_v19  ;;  %1416 = vmatprep.subr.bf16.mxu1 %v1577_v26 }
  0x90   : > { %p1795_p5 = pnand %p1794_p4, %p1788_p12 }
  0x92   : > { %509 = vmatpush1.bf16.msra.mxu0 %v1553_v21  ;;  %1417 = vmatpush3.bf16.msra.mxu1 %v1577_v26 }
  0x93   : > { %510 = vmatprep.subr.bf16.mxu0 %v1554_v22  ;;  %1418 = vmatprep.subr.bf16.mxu1 %v1581_v29  ;;  %v955_v22 = vshrl.u32 %v954_v20, 7 }
  0x95   : > { %v956_v26 = vsub.s32 0, %v955_v22  ;;  %v960_v41 = vsub.s32 1, %v955_v22 }
  0x96   : > { %511 = vmatpush1.bf16.msra.mxu0 %v1556_v24  ;;  %1419 = vmatpush3.bf16.msra.mxu1 %v1581_v29 }
  0x97   : > { %798 = vmatprep.subr.bf16.mxu0 %v1560_v25  ;;  %1420 = vmatprep.subr.bf16.mxu1 %v1585_v34 }
  0x99   : > { %529 = vmatmul.mubr.bf16.vlgmr.msra.gmra.mxu0 %v332_v12 }
  0x9a   : > { %799 = vmatpush1.bf16.msra.mxu0 %v1558_v27  ;;  %538 = vmatprep.mubr.bf16.mxu0 %v1871_v0 }
  0x9b   : > { %800 = vmatprep.subr.bf16.mxu0 %v1564_v28  ;;  %1421 = vmatpush3.bf16.msra.mxu1 %v1585_v34  ;;  %v952_v28 = vld [vmem:[%s2330_s4] sm:$0x3] }
  0x9c   : > { %1430 = vmatprep.subr.bf16.mxu1 %v1589_v38  ;;  %v2179_v31 = vrot.slane %v952_v28, %v956_v26  ;;  %v2189_v49 = vrot.slane %v952_v28, %v960_v41 }
  0x9e   : > { %801 = vmatpush1.bf16.msra.mxu0 %v1562_v30  ;;  %1423 = vmatmul.mubr.bf16.vlgmr.msra.gmra.mxu1 %v333_v35 }
  0x9f   : > { %802 = vmatprep.subr.bf16.mxu0 %v1568_v33  ;;  %1431 = vmatpush3.bf16.msra.mxu1 %v1589_v38 }
  0xa0   : > { %1432 = vmatprep.subr.bf16.mxu1 %v1590_v43  ;;  %1426 = vmatprep.mubr.bf16.mxu1 %v334_v44 }
  0xa1   : > { %539 = vmatmul.mubr.bf16.gmra.mxu0 %v333_v35 }
  0xa2   : > { %803 = vmatpush1.bf16.msra.mxu0 %v1566_v36  ;;  %548 = vmatprep.mubr.bf16.mxu0 %v1871_v0 }
  0xa3   : > { %804 = vmatprep.subr.bf16.mxu0 %v1572_v37  ;;  %1433 = vmatpush3.bf16.msra.mxu1 %v1590_v43 }
  0xa4   : > { %1434 = vmatprep.subr.bf16.mxu1 %v1591_v47 }
  0xa6   : > { %805 = vmatpush1.bf16.msra.mxu0 %v1570_v39  ;;  %1427 = vmatmul.mubr.bf16.gmra.mxu1 %v335_v54 }
  0xa7   : > { %806 = vmatprep.subr.bf16.mxu0 %v1576_v42  ;;  %1435 = vmatpush3.bf16.msra.mxu1 %v1591_v47 }
  0xa8   : > { %1436 = vmatprep.subr.bf16.mxu1 %v1592_v55  ;;  %1446 = vmatprep.mubr.bf16.mxu1 %v634_v57 }
  0xa9   : > { %549 = vmatmul.mubr.bf16.gmra.mxu0 %v334_v44 }
  0xaa   : > { %807 = vmatpush1.bf16.msra.mxu0 %v1574_v45  ;;  %558 = vmatprep.mubr.bf16.mxu0 %v1871_v0 }
  0xab   : > { %808 = vmatprep.subr.bf16.mxu0 %v1580_v46  ;;  %1437 = vmatpush3.bf16.msra.mxu1 %v1592_v55 }
  0xac   : > { %1438 = vmatprep.subr.bf16.mxu1 %v1593_v59 }
  0xae   : > { %809 = vmatpush1.bf16.msra.mxu0 %v1578_v50 }
  0xaf   : > { %810 = vmatprep.subr.bf16.mxu0 %v1584_v51  ;;  %1439 = vmatpush3.bf16.msra.mxu1 %v1593_v59 }
  0xb0   : > { %1440 = vmatprep.subr.bf16.mxu1 %v1594_v61 }
  0xb1   : > { %559 = vmatmul.mubr.bf16.gmra.mxu0 %v335_v54 }
  0xb2   : > { %811 = vmatpush1.bf16.msra.mxu0 %v1582_v56  ;;  %830 = vmatprep.mubr.bf16.mxu0 %v1871_v0 }
  0xb3   : > { %812 = vmatprep.subr.bf16.mxu0 %v1588_v58  ;;  %1441 = vmatpush3.bf16.msra.mxu1 %v1594_v61 }
  0xb4   : > { %1442 = vmatprep.subr.bf16.mxu1 %v1595_v62 }
  0xb6   : > { %813 = vmatpush1.bf16.msra.mxu0 %v1586_v60 }
  0xb7   : > { %1443 = vmatpush3.bf16.msra.mxu1 %v1595_v62 }
  0xb8   : > { %1444 = vmatprep.subr.bf16.mxu1 %v1596_v2 }
  0xb9   : > { %831 = vmatmul.mubr.bf16.vlgmr.msra.gmra.mxu0 %v634_v57 }
  0xba   : > { %840 = vmatprep.mubr.bf16.mxu0 %v1871_v0 }
  0xbb   : > { %1445 = vmatpush3.bf16.msra.mxu1 %v1596_v2 }
  0xbe   : > { %1447 = vmatmul.mubr.bf16.vlgmr.msra.gmra.mxu1 %v635_v3 }
  0xbf   : > { %1450 = vmatprep.mubr.bf16.mxu1 %v636_v6 }
  0xc1   : > { %841 = vmatmul.mubr.bf16.gmra.mxu0 %v635_v3 }
  0xc2   : > { %850 = vmatprep.mubr.bf16.mxu0 %v1871_v0 }
  0xc6   : > { %1451 = vmatmul.mubr.bf16.gmra.mxu1 %v637_v9 }
  0xc9   : > { %851 = vmatmul.mubr.bf16.gmra.mxu0 %v636_v6 }
  0xca   : > { %860 = vmatprep.mubr.bf16.mxu0 %v1871_v0 }
  0xd1   : > { %861 = vmatmul.mubr.bf16.gmra.mxu0 %v637_v9 }
 0x159   : > { %v530_v10 = vpop.f32.mrf.mxu0 }
 0x15b   : > { %v532_v11 = vpop.f32.mrf.mxu0 }
 0x15d   : > { %v534_v12 = vpop.f32.mrf.mxu0 }
 0x15e   : > { %v2166_v24 = vpop.f32.mrf.mxu1 }
 0x15f   : > { %v536_v13 = vpop.f32.mrf.mxu0 }
 0x160   : > { %v2175_v29 = vpop.f32.mrf.mxu1 }
 0x161   : > { %v540_v14 = vpop.f32.mrf.mxu0 }
 0x162   : > { %v2181_v33 = vpop.f32.mrf.mxu1 }
 0x163   : > { %v542_v15 = vpop.f32.mrf.mxu0 }
 0x164   : > { %v2184_v38 = vpop.f32.mrf.mxu1 }
 0x165   : > { %v544_v16 = vpop.f32.mrf.mxu0 }
 0x166   : > { %v2186_v43 = vpop.f32.mrf.mxu1 }
 0x167   : > { %v2158_v17 = vpop.f32.mrf.mxu0 }
 0x168   : > { %v2191_v51 = vpop.f32.mrf.mxu1 }
 0x169   : > { %v550_v18 = vpop.f32.mrf.mxu0 }
 0x16a   : > { %v2195_v61 = vpop.f32.mrf.mxu1 }
 0x16b   : > { %v2160_v19 = vpop.f32.mrf.mxu0 }
 0x16d   : > { %v554_v21 = vpop.f32.mrf.mxu0 }
 0x16f   : > { %v2162_v0 = vpop.f32.mrf.mxu0 }
 0x171   : > { %v2164_v23 = vpop.f32.mrf.mxu0 }
 0x173   : > { %v2168_v25 = vpop.f32.mrf.mxu0 }
 0x175   : > { %v2170_v27 = vpop.f32.mrf.mxu0 }
 0x177   : > { %v2177_v30 = vpop.f32.mrf.mxu0 }
 0x179   : > { %v832_v32 = vpop.f32.mrf.mxu0 }
 0x17a   : > { %v936_v34 = vadd.f32 %v832_v32, %v530_v10 }
 0x17b   : > { %v834_v35 = vpop.f32.mrf.mxu0 }
 0x17c   : > { %v964_v36 = vadd.f32 %v2179_v31, %v936_v34  ;;  %v937_v48 = vadd.f32 %v834_v35, %v532_v11 }
 0x17d   : > { %v836_v37 = vpop.f32.mrf.mxu0 }
 0x17e   : > { %v1356_v39 = vmul.f32 -1.442695, %v964_v36  ;;  %v938_v40 = vadd.f32 %v836_v37, %v534_v12  ;;  %v965_v59 = vadd.f32 %v2189_v49, %v937_v48 }
 0x17f   : > { %v838_v42 = vpop.f32.mrf.mxu0 }
 0x180   : > { %1597 = vpow2.f32 %v1356_v39  ;;  %v966_v44 = vadd.f32 %v2179_v31, %v938_v40  ;;  %v939_v56 = vadd.f32 %v838_v42, %v536_v13  ;;  %v1357_v10 = vmul.f32 -1.442695, %v965_v59 }
 0x181   : > { %v842_v45 = vpop.f32.mrf.mxu0 }
 0x182   : > { %v1358_v46 = vmul.f32 -1.442695, %v966_v44  ;;  %v940_v47 = vadd.f32 %v842_v45, %v540_v14  ;;  %v967_v3 = vadd.f32 %v2189_v49, %v939_v56  ;;  %v2199_v14 = vpop.f32.mrf.mxu1 }
 0x183   : > { %v844_v50 = vpop.f32.mrf.mxu0 }
 0x184   : > { %1599 = vpow2.f32 %v1358_v46  ;;  %v968_v54 = vadd.f32 %v2179_v31, %v940_v47  ;;  %v941_v11 = vadd.f32 %v844_v50, %v542_v15  ;;  %v1359_v26 = vmul.f32 -1.442695, %v967_v3  ;;  %v2204_v36 = vpop.f32.mrf.mxu1 }
 0x185   : > { %v846_v55 = vpop.f32.mrf.mxu0 }
 0x186   : > { %v1360_v57 = vmul.f32 -1.442695, %v968_v54  ;;  %v942_v58 = vadd.f32 %v846_v55, %v544_v16  ;;  %v969_v32 = vadd.f32 %v2189_v49, %v941_v11  ;;  %v905_v46 = vpop.f32.mrf.mxu1 }
 0x187   : > { %v848_v60 = vpop.f32.mrf.mxu0 }
 0x188   : > { %1601 = vpow2.f32 %v1360_v57  ;;  %v970_v62 = vadd.f32 %v2179_v31, %v942_v58  ;;  %v943_v34 = vadd.f32 %v848_v60, %v2158_v17  ;;  %v1361_v42 = vmul.f32 -1.442695, %v969_v32  ;;  %v1449_v58 = vpop.f32.mrf.mxu1 }
 0x189   : > { %v852_v2 = vpop.f32.mrf.mxu0 }
 0x18a   : > { %v1362_v6 = vmul.f32 -1.442695, %v970_v62  ;;  %v944_v9 = vadd.f32 %v852_v2, %v550_v18  ;;  %v971_v44 = vadd.f32 %v2189_v49, %v943_v34 }
 0x18b   : > { %v854_v12 = vpop.f32.mrf.mxu0 }
 0x18c   : > { %1603 = vpow2.f32 %v1362_v6  ;;  %v972_v13 = vadd.f32 %v2179_v31, %v944_v9  ;;  %v945_v45 = vadd.f32 %v854_v12, %v2160_v19  ;;  %v2216_v19 = vld [vmem:[%s2330_s4 + $0x3] ss:$0 sm:$0xff]  ;;  %v2224_v6 = vld [vmem:[%s2330_s4 + $0x2] ss:$0 sm:$0xff] }
 0x18d   : > { %v1598_v16 = vpop.eup %1597  ;;  %v856_v20 = vpop.f32.mrf.mxu0  ;;  %1605 = vpow2.f32 %v1357_v10 }
 0x18e   : > { %v1028_v22 = vadd.f32 1.0, %v1598_v16  ;;  %v1364_v28 = vmul.f32 -1.442695, %v972_v13  ;;  %v946_v35 = vadd.f32 %v856_v20, %v554_v21  ;;  %v973_v57 = vadd.f32 %v2189_v49, %v945_v45  ;;  %v908_v10 = vpop.f32.mrf.mxu1 }
 0x18f   : > { %v858_v18 = vpop.f32.mrf.mxu0  ;;  %v1083_v20 = vadd.f32 %v2224_v6, %v2175_v29  ;;  %v1084_v29 = vadd.f32 %v2224_v6, %v2184_v38  ;;  %v1085_v38 = vadd.f32 %v2166_v24, %v2224_v6 }
 0x190   : > { %1607 = vrcp.f32 %v1028_v22  ;;  %v974_v37 = vadd.f32 %v2179_v31, %v946_v35  ;;  %v947_v59 = vadd.f32 %v858_v18, %v2162_v0  ;;  %v1365_v9 = vmul.f32 -1.442695, %v973_v57 }
 0x191   : > { %v1600_v15 = vpop.eup %1599  ;;  %1609 = vpow2.f32 %v1364_v28  ;;  %v862_v39 = vpop.f32.mrf.mxu0 }
 0x192   : > { %v1030_v40 = vadd.f32 1.0, %v1600_v15  ;;  %1611 = vpow2.f32 %v1359_v26  ;;  %v948_v41 = vadd.f32 %v862_v39, %v2164_v23  ;;  %v1366_v17 = vmul.f32 -1.442695, %v974_v37  ;;  %v2233_v37 = vpop.f32.mrf.mxu1 }
 0x193   : > { %v864_v21 = vpop.f32.mrf.mxu0  ;;  %v1363_v23 = vmul.f32 -1.442695, %v971_v44  ;;  %v975_v0 = vadd.f32 %v2189_v49, %v947_v59  ;;  %v1099_v26 = vadd.f32 %v2216_v19, %v908_v10 }
 0x194   : > { %1613 = vrcp.f32 %v1030_v40  ;;  %v976_v47 = vadd.f32 %v2179_v31, %v948_v41  ;;  %v1100_v41 = vadd.f32 %v2204_v36, %v2216_v19  ;;  %v1101_v36 = vadd.f32 %v1449_v58, %v2216_v19 }
 0x195   : > { %v1602_v48 = vpop.eup %1601  ;;  %1615 = vpow2.f32 %v1366_v17  ;;  %v866_v50 = vpop.f32.mrf.mxu0  ;;  %v1367_v35 = vmul.f32 -1.442695, %v975_v0 }
 0x196   : > { %v1032_v54 = vadd.f32 1.0, %v1602_v48  ;;  %v1368_v55 = vmul.f32 -1.442695, %v976_v47  ;;  %v950_v56 = vadd.f32 %v866_v50, %v2170_v27  ;;  %1617 = vpow2.f32 %v1361_v42  ;;  %v921_v47 = vpop.f32.mrf.mxu1 }
 0x197   : > { %v1098_v27 = vadd.f32 %v2216_v19, %v905_v46  ;;  %v868_v13 = vpop.f32.mrf.mxu0  ;;  %v1102_v58 = vadd.f32 %v2216_v19, %v921_v47 }
 0x198   : > { %1619 = vrcp.f32 %v1032_v54  ;;  %v978_v60 = vadd.f32 %v2179_v31, %v950_v56  ;;  %v949_v31 = vadd.f32 %v864_v21, %v2168_v25  ;;  %v951_v15 = vadd.f32 %v868_v13, %v2177_v30 }
 0x199   : > { %v1604_v62 = vpop.eup %1603  ;;  %1621 = vpow2.f32 %v1368_v55 }
 0x19a   : > { %v1034_v2 = vadd.f32 1.0, %v1604_v62  ;;  %v1370_v3 = vmul.f32 -1.442695, %v978_v60  ;;  %1623 = vpow2.f32 %v1363_v23  ;;  %v1606_v11 = vpop.eup %1605  ;;  %v977_v18 = vadd.f32 %v2189_v49, %v949_v31 }
 0x19b   : > { %v1029_v32 = vadd.f32 1.0, %v1606_v11  ;;  %v979_v21 = vadd.f32 %v2189_v49, %v951_v15  ;;  %v1453_v49 = vpop.f32.mrf.mxu1 }
 0x19c   : > { %1625 = vrcp.f32 %v1034_v2  ;;  %v1369_v30 = vmul.f32 -1.442695, %v977_v18  ;;  %v1086_v2 = vadd.f32 %v2181_v33, %v2224_v6  ;;  %v1088_v18 = vadd.f32 %v2224_v6, %v2199_v14 }
 0x19d   : > { %v1608_v12 = vpop.eup %1607  ;;  %1627 = vpow2.f32 %v1370_v3  ;;  %v1371_v57 = vmul.f32 -1.442695, %v979_v21  ;;  %v924_v11 = vpop.f32.mrf.mxu1 }
 0x19e   : > { %v1610_v16 = vpop.eup %1609  ;;  %v1106_v22 = vmul.f32 %v1608_v12, %v1098_v27  ;;  %1629 = vpow2.f32 %v1365_v9  ;;  %v1087_v12 = vadd.f32 %v2224_v6, %v2191_v51  ;;  %v1103_v33 = vadd.f32 %v2216_v19, %v924_v11 }
 0x19f   : > { %v1612_v28 = vpop.eup %1611  ;;  %v1036_v34 = vadd.f32 1.0, %v1610_v16 }
 0x1a0   : > { %v1114_v25 = vadd.f32 %v1106_v22, %v1083_v20  ;;  %v1031_v44 = vadd.f32 1.0, %v1612_v28 }
 0x1a1   : > { %v1614_v39 = vpop.eup %1613  ;;  %1631 = vrcp.f32 %v1036_v34 }
 0x1a2   : > { %v1616_v40 = vpop.eup %1615  ;;  %1633 = vtanh.f32 %v1114_v25  ;;  %v1107_v42 = vmul.f32 %v1614_v39, %v1099_v26 }
 0x1a3   : > { %1635 = vrcp.f32 %v1029_v32  ;;  %v1038_v45 = vadd.f32 1.0, %v1616_v40  ;;  %v1618_v17 = vpop.eup %1617 }
 0x1a4   : > { %1637 = vpow2.f32 %v1367_v35  ;;  %v1115_v46 = vadd.f32 %v1107_v42, %v1084_v29  ;;  %v1033_v55 = vadd.f32 1.0, %v1618_v17 }
 0x1a5   : > { %v1620_v48 = vpop.eup %1619  ;;  %1639 = vrcp.f32 %v1038_v45  ;;  %v1089_v45 = vadd.f32 %v2186_v43, %v2224_v6  ;;  %v1090_v43 = vadd.f32 %v2195_v61, %v2224_v6 }
 0x1a6   : > { %v1622_v50 = vpop.eup %1621  ;;  %v1108_v54 = vmul.f32 %v1620_v48, %v1100_v41  ;;  %1641 = vtanh.f32 %v1115_v46  ;;  %v1105_v48 = vadd.f32 %v1453_v49, %v2216_v19 }
 0x1a7   : > { %1643 = vrcp.f32 %v1031_v44  ;;  %v1040_v56 = vadd.f32 1.0, %v1622_v50  ;;  %v1624_v23 = vpop.eup %1623 }
 0x1a8   : > { %1645 = vpow2.f32 %v1369_v30  ;;  %v1116_v59 = vadd.f32 %v1108_v54, %v1085_v38  ;;  %v1035_v9 = vadd.f32 1.0, %v1624_v23 }
 0x1a9   : > { %v1626_v60 = vpop.eup %1625  ;;  %1647 = vrcp.f32 %v1040_v56 }
 0x1aa   : > { %v1628_v62 = vpop.eup %1627  ;;  %1649 = vtanh.f32 %v1116_v59  ;;  %v1109_v24 = vmul.f32 %v1626_v60, %v1101_v36 }
 0x1ab   : > { %1651 = vrcp.f32 %v1033_v55  ;;  %v1042_v3 = vadd.f32 1.0, %v1628_v62  ;;  %v1630_v27 = vpop.eup %1629 }
 0x1ac   : > { %1653 = vpow2.f32 %v1371_v57  ;;  %v1117_v10 = vadd.f32 %v1109_v24, %v1086_v2  ;;  %v1037_v26 = vadd.f32 1.0, %v1630_v27 }
 0x1ad   : > { %1655 = vrcp.f32 %v1042_v3 }
 0x1ae   : > { %v1632_v0 = vpop.eup %1631  ;;  %1657 = vtanh.f32 %v1117_v10 }
 0x1af   : > { %v1634_v31 = vpop.eup %1633  ;;  %v1110_v13 = vmul.f32 %v1632_v0, %v1102_v58  ;;  %1659 = vrcp.f32 %v1035_v9 }
 0x1b0   : > { %v1636_v16 = vpop.eup %1635  ;;  %v1130_v20 = vsub.f32 %v2123_v52, %v1634_v31  ;;  %v1104_v52 = vadd.f32 %v2233_v37, %v2216_v19 }
 0x1b1   : > { %v1638_v22 = vpop.eup %1637  ;;  %v1118_v28 = vadd.f32 %v1110_v13, %v1087_v12 }
 0x1b2   : > { %v1640_v32 = vpop.eup %1639  ;;  %v1138_v34 = vmul.f32 %v1636_v16, %v1130_v20  ;;  %v1039_v29 = vadd.f32 1.0, %v1638_v22 }
 0x1b3   : > { %v1642_v35 = vpop.eup %1641  ;;  %1661 = vtanh.f32 %v1118_v28  ;;  %v1111_v15 = vmul.f32 %v1640_v32, %v1103_v33 }
 0x1b4   : > { %v1644_v51 = vpop.eup %1643  ;;  %v1146_v25 = vadd.f32 %v1634_v31, %v1138_v34  ;;  %v1131_v39 = vsub.f32 %v2126_v53, %v1642_v35  ;;  %1663 = vrcp.f32 %v1037_v26 }
 0x1b5   : > { %v1646_v40 = vpop.eup %1645  ;;  %v1119_v41 = vadd.f32 %v1111_v15, %v1088_v18 }
 0x1b6   : > { %v1648_v42 = vpop.eup %1647  ;;  %1154 = vst [vmem:[%s2256_s6] sm:$0xff] %v1146_v25  ;;  %v1139_v14 = vmul.f32 %v1644_v51, %v1131_v39  ;;  %v1041_v37 = vadd.f32 1.0, %v1646_v40 }
 0x1b7   : > { %v1650_v44 = vpop.eup %1649  ;;  %v1112_v17 = vmul.f32 %v1648_v42, %v1104_v52  ;;  %1665 = vtanh.f32 %v1119_v41 }
 0x1b8   : > { %v1652_v53 = vpop.eup %1651  ;;  %v1132_v30 = vsub.f32 %v2133_v63, %v1650_v44  ;;  %v1147_v21 = vadd.f32 %v1642_v35, %v1139_v14  ;;  %1667 = vrcp.f32 %v1039_v29 }
 0x1b9   : > { %v1654_v46 = vpop.eup %1653  ;;  %v1120_v47 = vadd.f32 %v1112_v17, %v1089_v45 }
 0x1ba   : > { %v1656_v50 = vpop.eup %1655  ;;  %v1140_v38 = vmul.f32 %v1652_v53, %v1132_v30  ;;  %1155 = vst [vmem:[%s2256_s6 + $0x8] sm:$0xff] %v1147_v21  ;;  %v1043_v23 = vadd.f32 1.0, %v1654_v46 }
 0x1bb   : > { %v1658_v54 = vpop.eup %1657  ;;  %1669 = vtanh.f32 %v1120_v47  ;;  %v1113_v36 = vmul.f32 %v1656_v50, %v1105_v48 }
 0x1bc   : > { %v1148_v55 = vadd.f32 %v1650_v44, %v1140_v38  ;;  %v1133_v63 = vsub.f32 %v2136_v1, %v1658_v54  ;;  %v1660_v56 = vpop.eup %1659  ;;  %1671 = vrcp.f32 %v1041_v37 }
 0x1bd   : > { %v1121_v57 = vadd.f32 %v1113_v36, %v1090_v43 }
 0x1be   : > { %1156 = vst [vmem:[%s2256_s6 + $0x10] sm:$0xff] %v1148_v55  ;;  %v1141_v19 = vmul.f32 %v1660_v56, %v1133_v63 }
 0x1bf   : > { %1673 = vtanh.f32 %v1121_v57 }
 0x1c0   : > { %v1662_v59 = vpop.eup %1661  ;;  %v1149_v49 = vadd.f32 %v1658_v54, %v1141_v19  ;;  %1675 = vrcp.f32 %v1043_v23 }
 0x1c1   : > { %v1134_v61 = vsub.f32 %v2142_v4, %v1662_v59  ;;  %v1664_v6 = vpop.eup %1663 }
 0x1c2   : > { %1157 = vst [vmem:[%s2256_s6 + $0x18] sm:$0xff] %v1149_v49 }
 0x1c3   : > { %v1142_v60 = vmul.f32 %v1664_v6, %v1134_v61 }
 0x1c4   : > { %v1666_v62 = vpop.eup %1665 }
 0x1c5   : > { %v1150_v1 = vadd.f32 %v1662_v59, %v1142_v60  ;;  %v1135_v2 = vsub.f32 %v2145_v5, %v1666_v62  ;;  %v1668_v24 = vpop.eup %1667 }
 0x1c7   : > { %1158 = vst [vmem:[%s2256_s6 + $0x20] sm:$0xff] %v1150_v1  ;;  %v1143_v3 = vmul.f32 %v1668_v24, %v1135_v2 }
 0x1c8   : > { %v1670_v58 = vpop.eup %1669 }
 0x1c9   : > { %v1136_v27 = vsub.f32 %v2150_v7, %v1670_v58  ;;  %v1151_v9 = vadd.f32 %v1666_v62, %v1143_v3  ;;  %v1672_v4 = vpop.eup %1671 }
 0x1cb   : > { %v1144_v10 = vmul.f32 %v1672_v4, %v1136_v27  ;;  %1159 = vst [vmem:[%s2256_s6 + $0x28] sm:$0xff] %v1151_v9 }
 0x1cc   : > { %v1674_v11 = vpop.eup %1673 }
 0x1cd   : > { %v1152_v0 = vadd.f32 %v1670_v58, %v1144_v10  ;;  %v1137_v31 = vsub.f32 %v2153_v8, %v1674_v11  ;;  %v1676_v5 = vpop.eup %1675 }
 0x1cf   : > { %1160 = vst [vmem:[%s2256_s6 + $0x30] sm:$0xff] %v1152_v0  ;;  %v1145_v12 = vmul.f32 %v1676_v5, %v1137_v31 }
 0x1d1   : > { %v1153_v7 = vadd.f32 %v1674_v11, %v1145_v12 }
 0x1d3   : > { %1161 = vst [vmem:[%s2256_s6 + $0x38] sm:$0xff] %v1153_v7 }
 0x1d4   : > { %1798 = shalt.err (!%p1795_p5)
}
 0x1d5   : > { %s1799_s13 = scalar_lea.hbm %s2281_s8, 1024  ;;  %s1803_s28 = scalar_lea.hbm %s2331_s5, 8192 }
 0x1d6   : > { %p1800_p2 = scmp.ne.s32.totalorder %s2281_s8, %s1799_s13  ;;  %p1804_p10 = scmp.lt.s32.totalorder %s2281_s8, %s2331_s5 }
 0x1d7   : > { %p1805_p0 = scmp.lt.s32.totalorder %s1803_s28, %s1799_s13 }
 0x1d8   : > { %p1801_p13 = pnand %p1800_p2, %p2351_p7 }
 0x1d9   : > { %p1806_p6 = por %p1805_p0, %p1804_p10 }
 0x1da   : > { %p1802_p8 = pneg %p1801_p13 }
 0x1dc   : > { %p1807_p11 = pnand %p1806_p6, %p1802_p8 }
 0x1de   : > { %1810 = shalt.err (!%p1807_p11)
}
 0x1df   : > { %s1873_s12 = smov 128   ;;  %s1874_s6 = smov 8  }
 0x1e0   : > { %1466 = dma.vmem_to_hbm [thread:$0]  (%p2351_p7), %s2283_s7, 1024, %s2281_s8, %s1163_s10, %s1873_s12, %s1873_s12, %s1874_s6  }
 0x1e1 PF: > { %p1491_p9 = scmp.ge.s32.totalorder %s1861_s21, 2  ;;  %s1191_s29 = sand.u32 1, %s1849_s18  }
 0x1e2   : > { %p2352_p12 = scmp.ne.s32.totalorder %s2338_s25, 0  ;;  %s1192_s9 = scalar_lea.sflag [#allocation4], %s1191_s29 }
 0x1e4   : > { %p1483_p3 = pnand %p1491_p9, %p2352_p12 }
 0x1e6   : > { %p1484_p1 = pneg %p1483_p3 }
 0x1e8   : > { %1844 = dma.done.wait (%p1484_p1), %s1192_s9, 1024  }
 0x1e9   : > { %1846 = vsyncadd (%p1484_p1), %s1192_s9, 4294966272  ;;  %p22_p4 = scmp.ge.s32.totalorder %s1976_s15, 10   ;;  %s2353_s18 = smov %s1853_s19 }
 0x1ea   : > { %s2354_s19 = smov %s1857_s20  ;;  %s2355_s20 = smov %s1992_s27 }
 0x1eb   : > { %s2356_s21 = smov %s1976_s15  ;;  %24 = sbr.rel (!%p22_p4) target bundleno = 11 (0xb), region = 106 }
 0x1f0   :  { %1197 = vsyncpa [#allocation3], 1 }
 0x1f1   :  { %1199 = vsyncpa [#allocation3 + $0x1], 1 }
 0x1f2   :  { %1200 = vsyncpa [#allocation6], 1 }
 0x1f3   :  { %1202 = vsyncpa [#allocation6 + $0x1], 1 }
 0x1f4   :  { %1203 = vsyncpa [#allocation9], 1 }
 0x1f5   :  { %1204 = vsyncpa [#allocation4], 1 }
 0x1f6   :  { %1206 = vsyncpa [#allocation4 + $0x1], 1 }

</bundles_post_ra>
